<compile_context>
chip_gen: v5e
topology: v5e:2x2
jax: 0.10.0
libtpu: 0.0.40
codegen_flags: <defaults>
</compile_context>

<pallas_src>
import functools

import jax
import jax.numpy as jnp
from jax.experimental import pallas as pl
from jax.experimental.pallas import tpu as pltpu

BN_EPS = 1e-5
LRELU_SLOPE = 0.2
LANE = 128


def _round_up(n, m):
    return ((n + m - 1) // m) * m


def _vmem_cap_bytes():
    """Per-generation upper bound for the scoped-VMEM request."""
    try:
        kind = jax.devices()[0].device_kind.lower()
    except Exception:  # pragma: no cover - defensive
        kind = ""
    if "v7" in kind:
        return 48 * 1024 * 1024   # v7x: 64 MiB physical per TensorCore
    return 100 * 1024 * 1024      # v5e / v6e: 128 MiB physical


def _derive_vmem_limit(B, F_pad, no_pad):
    """Size-derived VMEM budget: live buffers (incl. double buffering) + slack."""
    bf16, f32 = 2, 4
    need = 0
    need += 2 * F_pad * F_pad * bf16      # streamed hidden-weight tile x2 buffers
    need += 2 * 2 * F_pad * f32           # gamma/beta tiles x2 buffers
    need += 2 * B * F_pad * bf16          # x input block
    need += 2 * F_pad * no_pad * bf16     # resident output weight
    need += 2 * no_pad * f32              # output bias
    need += 2 * B * no_pad * f32          # output block
    need += B * F_pad * bf16              # persistent activation scratch
    need += 4 * B * F_pad * f32           # f32 temporaries (y + BN epilogue)
    slack = 4 * 1024 * 1024
    return int(min(_vmem_cap_bytes(), max(2 * need + slack, 16 * 1024 * 1024)))


# ------------------------------ fused kernel --------------------------------


def _fused_mlp_kernel(x_ref, w_ref, g_ref, beta_ref, wo_ref, bo_ref, o_ref,
                      h_ref):
    """One grid step = one hidden layer; output linear fused into the last step.

    x_ref    : [B, F_pad] bf16 (resident, constant index)
    w_ref    : [1, F_pad, F_pad] bf16 (streamed layer weight tile)
    g_ref    : [1, 1, F_pad] f32 (BN gamma)      beta_ref: [1, 1, F_pad] f32
    wo_ref   : [F_pad, no_pad] bf16 (resident)   bo_ref  : [1, no_pad] f32
    o_ref    : [B, no_pad] f32 (written at the last step only)
    h_ref    : [B, F_pad] bf16 VMEM scratch, persists across grid steps
    """
    layer = pl.program_id(0)

    @pl.when(layer == 0)
    def _():
        h_ref[...] = x_ref[...]

    h = h_ref[...]                                                 # bf16
    # Linear (no bias, since batch_norm=True): bf16 MXU, f32 accumulate.
    y = jnp.dot(h, w_ref[0], preferred_element_type=jnp.float32)  # [B, F] f32

    # BatchNorm1d, training mode (biased batch variance), one-pass stats,
    # folded into a single scale/shift FMA.  f32 throughout (v5e-safe).
    mean = jnp.mean(y, axis=0, keepdims=True)
    var = jnp.maximum(jnp.mean(y * y, axis=0, keepdims=True) - mean * mean, 0.0)
    scale = g_ref[0] * jax.lax.rsqrt(var + BN_EPS)
    shift = beta_ref[0] - mean * scale
    y = y * scale + shift

    # LeakyReLU(0.2) as a single max (slope in (0,1)).
    y = jnp.maximum(y, LRELU_SLOPE * y)

    h_new = y.astype(jnp.bfloat16)
    h_ref[...] = h_new

    @pl.when(layer == pl.num_programs(0) - 1)
    def _():
        # Output layer: out = h @ W_out + b_out.
        z = jnp.dot(h_new, wo_ref[...], preferred_element_type=jnp.float32)
        o_ref[...] = (z + bo_ref[...]).astype(o_ref.dtype)


def _linear_only_kernel(x_ref, wo_ref, bo_ref, o_ref):
    """nlayers == 0 fallback: just the output linear."""
    z = jnp.dot(x_ref[...], wo_ref[...], preferred_element_type=jnp.float32)
    o_ref[...] = (z + bo_ref[...]).astype(o_ref.dtype)


# ------------------------------ forward pass --------------------------------


@functools.partial(jax.jit, static_argnames=("no",))
def mlp_forward(padded_params, x, *, no):
    """Pallas forward matching MLP.forward (batch_norm=True, spectral_norm=False).

    padded_params: output of pad_and_cast_params (lane-padded, stacked, bf16
    weights).  x: [B, ni] f32.  Returns [B, no] f32.
    """
    w_stack = padded_params["w_stack"]          # [nlayers, F_pad, F_pad] bf16
    g_stack = padded_params["gamma_stack"]      # [nlayers, 1, F_pad] f32
    beta_stack = padded_params["beta_stack"]    # [nlayers, 1, F_pad] f32
    w_out = padded_params["w_out"]              # [F_pad, no_pad] bf16
    b_out = padded_params["b_out"]              # [1, no_pad] f32

    nlayers = w_stack.shape[0]
    F_pad, no_pad = w_out.shape
    B, ni = x.shape

    # Zero-pad input features (zero rows of W -> no effect) and pre-cast to bf16.
    if ni < F_pad:
        x = jnp.pad(x, ((0, 0), (0, F_pad - ni)))
    xb = x.astype(jnp.bfloat16)

    vmem_limit = _derive_vmem_limit(B, F_pad, no_pad)

    if nlayers == 0:
        out = pl.pallas_call(
            _linear_only_kernel,
            out_shape=jax.ShapeDtypeStruct((B, no_pad), jnp.float32),
            in_specs=[pl.BlockSpec(memory_space=pltpu.MemorySpace.VMEM)] * 3,
            out_specs=pl.BlockSpec(memory_space=pltpu.MemorySpace.VMEM),
            compiler_params=pltpu.CompilerParams(vmem_limit_bytes=vmem_limit),
        )(xb, w_out, b_out)
        return out[:, :no]

    grid_spec = pltpu.PrefetchScalarGridSpec(
        num_scalar_prefetch=0,
        grid=(nlayers,),
        in_specs=[
            pl.BlockSpec((B, F_pad), lambda l: (0, 0)),            # x (resident)
            pl.BlockSpec((1, F_pad, F_pad), lambda l: (l, 0, 0)),  # streamed W_l
            pl.BlockSpec((1, 1, F_pad), lambda l: (l, 0, 0)),      # gamma_l
            pl.BlockSpec((1, 1, F_pad), lambda l: (l, 0, 0)),      # beta_l
            pl.BlockSpec((F_pad, no_pad), lambda l: (0, 0)),       # W_out (resident)
            pl.BlockSpec((1, no_pad), lambda l: (0, 0)),           # b_out (resident)
        ],
        out_specs=pl.BlockSpec((B, no_pad), lambda l: (0, 0)),
        scratch_shapes=[pltpu.VMEM((B, F_pad), jnp.bfloat16)],     # persistent h
    )

    out = pl.pallas_call(
        _fused_mlp_kernel,
        out_shape=jax.ShapeDtypeStruct((B, no_pad), jnp.float32),
        grid_spec=grid_spec,
        compiler_params=pltpu.CompilerParams(
            dimension_semantics=("arbitrary",),   # sequential layer dependency
            vmem_limit_bytes=vmem_limit),
    )(xb, w_stack, g_stack, beta_stack, w_out, b_out)

    return out[:, :no]


# ------------------------------- parameters ---------------------------------


def init_mlp_params(key, ni, no, nhidden, nlayers, batch_norm=True):
    """Deterministic params mirroring the torch module's shapes.

    Hidden linear i: weight [in_i, nhidden] (pre-transposed), no bias (batch_norm).
    BatchNorm i:     gamma/beta of shape [1, nhidden].
    Output linear:   weight [last_in, no], bias [1, no].
    """
    params = {"hidden": [], "bn": []}
    fan_in = ni
    for _ in range(nlayers):
        key, kw = jax.random.split(key)
        bound = 1.0 / jnp.sqrt(fan_in)
        w = jax.random.uniform(kw, (fan_in, nhidden), jnp.float32, -bound, bound)
        params["hidden"].append(w)
        if batch_norm:
            key, kg, kb = jax.random.split(key, 3)
            gamma = 1.0 + 0.1 * jax.random.normal(kg, (1, nhidden), jnp.float32)
            beta = 0.1 * jax.random.normal(kb, (1, nhidden), jnp.float32)
            params["bn"].append((gamma, beta))
        fan_in = nhidden
    last_in = nhidden if nlayers > 0 else ni
    key, kw, kb = jax.random.split(key, 3)
    bound = 1.0 / jnp.sqrt(last_in)
    params["w_out"] = jax.random.uniform(kw, (last_in, no), jnp.float32, -bound, bound)
    params["b_out"] = jax.random.uniform(kb, (1, no), jnp.float32, -bound, bound)
    return params


def pad_and_cast_params(params, ni, no, nhidden, nlayers):
    """Zero-pad feature dims to multiples of 128, stack per-layer tensors along a
    leading layer axis for weight streaming, and cast weights to bf16.

    Padded hidden columns stay exactly zero through BN (gamma pad=1, beta pad=0,
    centered value 0) and LeakyReLU, so results are unchanged.  All hidden layers
    (including layer 0) are padded to a common F_pad = max(ni_pad, h_pad) so the
    weight stack is rectangular: padded weight ROWS are zero and the activation's
    padded columns are zero, so the extra rows/cols contribute nothing.
    """
    ni_pad = _round_up(ni, LANE)
    if nlayers > 0:
        F_pad = max(ni_pad, _round_up(nhidden, LANE))
    else:
        F_pad = ni_pad
    no_pad = _round_up(no, LANE)

    w_stack = jnp.zeros((nlayers, F_pad, F_pad), jnp.bfloat16)
    g_stack = jnp.ones((nlayers, 1, F_pad), jnp.float32)
    beta_stack = jnp.zeros((nlayers, 1, F_pad), jnp.float32)

    fan_in = ni
    for i, (w, (g, b)) in enumerate(zip(params["hidden"], params["bn"])):
        w_stack = w_stack.at[i, :fan_in, :nhidden].set(w.astype(jnp.bfloat16))
        g_stack = g_stack.at[i, :, :nhidden].set(g)
        beta_stack = beta_stack.at[i, :, :nhidden].set(b)
        fan_in = nhidden

    last_in = nhidden if nlayers > 0 else ni
    w_out = jnp.zeros((F_pad, no_pad), jnp.bfloat16)
    w_out = w_out.at[:last_in, :no].set(params["w_out"].astype(jnp.bfloat16))
    b_out = jnp.zeros((1, no_pad), jnp.float32).at[:, :no].set(params["b_out"])

    return {"w_stack": w_stack, "gamma_stack": g_stack, "beta_stack": beta_stack,
            "w_out": w_out, "b_out": b_out}


# ------------------------------- references ---------------------------------


def mlp_reference_bf16(params, x):
    """Pure-JAX reference with the same numerics (bf16 matmul inputs, f32 stats,
    one-pass biased variance, bf16 inter-layer activations)."""
    h = x
    for w, (g, b) in zip(params["hidden"], params["bn"]):
        y = jnp.dot(h.astype(jnp.bfloat16), w.astype(jnp.bfloat16),
                    preferred_element_type=jnp.float32)
        mean = jnp.mean(y, axis=0, keepdims=True)
        var = jnp.maximum(jnp.mean(y * y, axis=0, keepdims=True) - mean * mean, 0.0)
        scale = g * jax.lax.rsqrt(var + BN_EPS)
        shift = b - mean * scale
        y = y * scale + shift
        h = jnp.maximum(y, LRELU_SLOPE * y)
    y = jnp.dot(h.astype(jnp.bfloat16), params["w_out"].astype(jnp.bfloat16),
                preferred_element_type=jnp.float32)
    return y + params["b_out"]


def mlp_reference_f32(params, x):
    """Full-f32 reference of the original torch semantics (loose sanity check)."""
    h = x
    for w, (g, b) in zip(params["hidden"], params["bn"]):
        y = h @ w
        mean = jnp.mean(y, axis=0, keepdims=True)
        var = jnp.mean((y - mean) ** 2, axis=0, keepdims=True)
        y = (y - mean) / jnp.sqrt(var + BN_EPS)
        y = y * g + b
        h = jnp.where(y > 0, y, LRELU_SLOPE * y)
    return h @ params["w_out"] + params["b_out"]


# ---------------------------------- main -------------------------------------


if __name__ == "__main__":
    # TODO(synk): spectral_norm only re-parameterizes weights at update time; with
    # fixed weights it is a no-op for the forward pass, so it is not implemented.
    ni, no, nhidden, nlayers = 16, 8, 32, 3
    batch = 8  # multiple of 8 (sublane); batch is never padded/tiled (BN stats)

    key = jax.random.PRNGKey(0)
    key, kx = jax.random.split(key)
    x = jax.random.normal(kx, (batch, ni), jnp.float32)

    params = init_mlp_params(key, ni, no, nhidden, nlayers, batch_norm=True)
    padded = pad_and_cast_params(params, ni, no, nhidden, nlayers)

    out = mlp_forward(padded, x, no=no)
    out = jax.block_until_ready(out)
    assert out.shape == (batch, no), out.shape

    # Tight check against a pure-JAX model with identical numerics.
    ref = mlp_reference_bf16(params, x)
    err = float(jnp.max(jnp.abs(out - ref)))
    assert jnp.allclose(out, ref, atol=2e-3, rtol=2e-3), err

    # Loose sanity check against the full-f32 (original-module) semantics.
    ref32 = mlp_reference_f32(params, x)
    err32 = float(jnp.max(jnp.abs(out - ref32)))
    assert jnp.allclose(out, ref32, atol=1e-1, rtol=1e-1), err32

    print("KERNEL_OK")
</pallas_src>

<mosaic_0001>
module attributes {stable_mosaic.version = 11 : i64} {
  func.func @_fused_mlp_kernel(%arg0: i32, %arg1: memref<8x128xbf16, #tpu.memory_space<vmem>>, %arg2: memref<1x128x128xbf16, #tpu.memory_space<vmem>>, %arg3: memref<1x1x128xf32, #tpu.memory_space<vmem>>, %arg4: memref<1x1x128xf32, #tpu.memory_space<vmem>>, %arg5: memref<128x128xbf16, #tpu.memory_space<vmem>>, %arg6: memref<1x128xf32, #tpu.memory_space<vmem>>, %arg7: memref<8x128xf32, #tpu.memory_space<vmem>>, %arg8: memref<8x128xbf16, #tpu.memory_space<vmem>>) attributes {dimension_semantics = [#tpu.dimension_semantics<arbitrary>], iteration_bounds = array<i64: 3>, scalar_prefetch = 0 : i64, scratch_operands = 1 : i64, tpu.core_type = #tpu.core_type<tc>, window_params = [{pipeline_mode = #tpu.pipeline_mode<synchronous>, transform_indices = @transform_0, window_bounds = array<i64: 8, 128>}, {transform_indices = @transform_1, window_bounds = array<i64: 1, 128, 128>}, {transform_indices = @transform_2, window_bounds = array<i64: 1, 1, 128>}, {transform_indices = @transform_3, window_bounds = array<i64: 1, 1, 128>}, {pipeline_mode = #tpu.pipeline_mode<synchronous>, transform_indices = @transform_4, window_bounds = array<i64: 128, 128>}, {pipeline_mode = #tpu.pipeline_mode<synchronous>, transform_indices = @transform_5, window_bounds = array<i64: 1, 128>}, {pipeline_mode = #tpu.pipeline_mode<synchronous>, transform_indices = @transform_6, window_bounds = array<i64: 8, 128>}]} {
    %c0_i32 = arith.constant 0 : i32
    %0 = arith.cmpi eq, %arg0, %c0_i32 : i32
    %1 = arith.extui %0 : i1 to i32
    %c0_i32_0 = arith.constant 0 : i32
    %2 = arith.cmpi ne, %1, %c0_i32_0 : i32
    scf.if %2 {
      %c0_21 = arith.constant 0 : index
      %c0_22 = arith.constant 0 : index
      %42 = vector.load %arg1[%c0_21, %c0_22] : memref<8x128xbf16, #tpu.memory_space<vmem>>, vector<8x128xbf16>
      %c0_23 = arith.constant 0 : index
      %c0_24 = arith.constant 0 : index
      %43 = vector.load %arg8[%c0_23, %c0_24] : memref<8x128xbf16, #tpu.memory_space<vmem>>, vector<8x128xbf16>
      tpu.vector_store %arg8[%c0_23, %c0_24], %42 {strides = array<i32>} : memref<8x128xbf16, #tpu.memory_space<vmem>>, vector<8x128xbf16>,
    } else {
    }
    %c0 = arith.constant 0 : index
    %c0_1 = arith.constant 0 : index
    %3 = vector.load %arg8[%c0, %c0_1] : memref<8x128xbf16, #tpu.memory_space<vmem>>, vector<8x128xbf16>
    %c0_2 = arith.constant 0 : index
    %c0_3 = arith.constant 0 : index
    %c0_4 = arith.constant 0 : index
    %4 = vector.load %arg2[%c0_2, %c0_3, %c0_4] : memref<1x128x128xbf16, #tpu.memory_space<vmem>>, vector<1x128x128xbf16>
    %5 = vector.shape_cast %4 : vector<1x128x128xbf16> to vector<128x128xbf16>
    %cst = arith.constant dense<0.000000e+00> : vector<8x128xf32>
    %6 = tpu.matmul %3, %5, %cst {dimension_numbers = #tpu.dot_dimension_numbers<[1], [0], [0], [1], [0, 0, 1, 1], [], []>} : vector<8x128xbf16>, vector<128x128xbf16>, vector<8x128xf32> -> vector<8x128xf32>
    %cst_5 = arith.constant dense<0.000000e+00> : vector<128xf32>
    %7 = vector.multi_reduction <add>, %6, %cst_5 [0] : vector<8x128xf32> to vector<128xf32>
    %8 = vector.shape_cast %7 : vector<128xf32> to vector<1x128xf32>
    %cst_6 = arith.constant 8.000000e+00 : f32
    %9 = vector.broadcast %cst_6 : f32 to vector<1x128xf32>
    %10 = arith.divf %8, %9 : vector<1x128xf32>
    %11 = arith.mulf %6, %6 : vector<8x128xf32>
    %cst_7 = arith.constant dense<0.000000e+00> : vector<128xf32>
    %12 = vector.multi_reduction <add>, %11, %cst_7 [0] : vector<8x128xf32> to vector<128xf32>
    %13 = vector.shape_cast %12 : vector<128xf32> to vector<1x128xf32>
    %cst_8 = arith.constant 8.000000e+00 : f32
    %14 = vector.broadcast %cst_8 : f32 to vector<1x128xf32>
    %15 = arith.divf %13, %14 : vector<1x128xf32>
    %16 = arith.mulf %10, %10 : vector<1x128xf32>
    %17 = arith.subf %15, %16 : vector<1x128xf32>
    %cst_9 = arith.constant 0.000000e+00 : f32
    %18 = vector.broadcast %cst_9 : f32 to vector<1x128xf32>
    %19 = arith.maximumf %17, %18 : vector<1x128xf32>
    %c0_10 = arith.constant 0 : index
    %c0_11 = arith.constant 0 : index
    %c0_12 = arith.constant 0 : index
    %20 = vector.load %arg3[%c0_10, %c0_11, %c0_12] : memref<1x1x128xf32, #tpu.memory_space<vmem>>, vector<1x1x128xf32>
    %21 = vector.shape_cast %20 : vector<1x1x128xf32> to vector<1x128xf32>
    %cst_13 = arith.constant 9.99999974E-6 : f32
    %22 = vector.broadcast %cst_13 : f32 to vector<1x128xf32>
    %23 = arith.addf %19, %22 : vector<1x128xf32>
    %24 = math.rsqrt %23 : vector<1x128xf32>
    %25 = arith.mulf %21, %24 : vector<1x128xf32>
    %c0_14 = arith.constant 0 : index
    %c0_15 = arith.constant 0 : index
    %c0_16 = arith.constant 0 : index
    %26 = vector.load %arg4[%c0_14, %c0_15, %c0_16] : memref<1x1x128xf32, #tpu.memory_space<vmem>>, vector<1x1x128xf32>
    %27 = vector.shape_cast %26 : vector<1x1x128xf32> to vector<1x128xf32>
    %28 = arith.mulf %10, %25 : vector<1x128xf32>
    %29 = arith.subf %27, %28 : vector<1x128xf32>
    %30 = vector.broadcast %25 : vector<1x128xf32> to vector<8x128xf32>
    %31 = arith.mulf %6, %30 : vector<8x128xf32>
    %32 = vector.broadcast %29 : vector<1x128xf32> to vector<8x128xf32>
    %33 = arith.addf %31, %32 : vector<8x128xf32>
    %cst_17 = arith.constant 2.000000e-01 : f32
    %34 = vector.broadcast %cst_17 : f32 to vector<8x128xf32>
    %35 = arith.mulf %34, %33 : vector<8x128xf32>
    %36 = arith.maximumf %33, %35 : vector<8x128xf32>
    %37 = arith.truncf %36 : vector<8x128xf32> to vector<8x128xbf16>
    %c0_18 = arith.constant 0 : index
    %c0_19 = arith.constant 0 : index
    %38 = vector.load %arg8[%c0_18, %c0_19] : memref<8x128xbf16, #tpu.memory_space<vmem>>, vector<8x128xbf16>
    tpu.vector_store %arg8[%c0_18, %c0_19], %37 {strides = array<i32>} : memref<8x128xbf16, #tpu.memory_space<vmem>>, vector<8x128xbf16>,
    %c2_i32 = arith.constant 2 : i32
    %39 = arith.cmpi eq, %arg0, %c2_i32 : i32
    %40 = arith.extui %39 : i1 to i32
    %c0_i32_20 = arith.constant 0 : i32
    %41 = arith.cmpi ne, %40, %c0_i32_20 : i32
    scf.if %41 {
      %c0_21 = arith.constant 0 : index
      %c0_22 = arith.constant 0 : index
      %42 = vector.load %arg5[%c0_21, %c0_22] : memref<128x128xbf16, #tpu.memory_space<vmem>>, vector<128x128xbf16>
      %cst_23 = arith.constant dense<0.000000e+00> : vector<8x128xf32>
      %43 = tpu.matmul %37, %42, %cst_23 {dimension_numbers = #tpu.dot_dimension_numbers<[1], [0], [0], [1], [0, 0, 1, 1], [], []>} : vector<8x128xbf16>, vector<128x128xbf16>, vector<8x128xf32> -> vector<8x128xf32>
      %c0_24 = arith.constant 0 : index
      %c0_25 = arith.constant 0 : index
      %44 = vector.load %arg6[%c0_24, %c0_25] : memref<1x128xf32, #tpu.memory_space<vmem>>, vector<1x128xf32>
      %45 = vector.broadcast %44 : vector<1x128xf32> to vector<8x128xf32>
      %46 = arith.addf %43, %45 : vector<8x128xf32>
      %c0_26 = arith.constant 0 : index
      %c0_27 = arith.constant 0 : index
      %47 = vector.load %arg7[%c0_26, %c0_27] : memref<8x128xf32, #tpu.memory_space<vmem>>, vector<8x128xf32>
      tpu.vector_store %arg7[%c0_26, %c0_27], %46 {strides = array<i32>} : memref<8x128xf32, #tpu.memory_space<vmem>>, vector<8x128xf32>,
    } else {
    }
    return
  }
  func.func @transform_0(%arg0: i32) -> (i32, i32) {
    %c0_i32 = arith.constant 0 : i32
    %c0_i32_0 = arith.constant 0 : i32
    %c0_i32_1 = arith.constant 0 : i32
    return %c0_i32, %c0_i32_0 : i32, i32
  }
  func.func @transform_1(%arg0: i32) -> (i32, i32, i32) {
    %c0_i32 = arith.constant 0 : i32
    %c0_i32_0 = arith.constant 0 : i32
    %c0_i32_1 = arith.constant 0 : i32
    return %arg0, %c0_i32, %c0_i32_0 : i32, i32, i32
  }
  func.func @transform_2(%arg0: i32) -> (i32, i32, i32) {
    %c0_i32 = arith.constant 0 : i32
    %c0_i32_0 = arith.constant 0 : i32
    %c0_i32_1 = arith.constant 0 : i32
    return %arg0, %c0_i32, %c0_i32_0 : i32, i32, i32
  }
  func.func @transform_3(%arg0: i32) -> (i32, i32, i32) {
    %c0_i32 = arith.constant 0 : i32
    %c0_i32_0 = arith.constant 0 : i32
    %c0_i32_1 = arith.constant 0 : i32
    return %arg0, %c0_i32, %c0_i32_0 : i32, i32, i32
  }
  func.func @transform_4(%arg0: i32) -> (i32, i32) {
    %c0_i32 = arith.constant 0 : i32
    %c0_i32_0 = arith.constant 0 : i32
    %c0_i32_1 = arith.constant 0 : i32
    return %c0_i32, %c0_i32_0 : i32, i32
  }
  func.func @transform_5(%arg0: i32) -> (i32, i32) {
    %c0_i32 = arith.constant 0 : i32
    %c0_i32_0 = arith.constant 0 : i32
    %c0_i32_1 = arith.constant 0 : i32
    return %c0_i32, %c0_i32_0 : i32, i32
  }
  func.func @transform_6(%arg0: i32) -> (i32, i32) {
    %c0_i32 = arith.constant 0 : i32
    %c0_i32_0 = arith.constant 0 : i32
    %c0_i32_1 = arith.constant 0 : i32
    return %c0_i32, %c0_i32_0 : i32, i32
  }
}

</mosaic_0001>

<bundles_post_ra>
// kernel: mlp_forward.1
= control target key start
LH: loop header
LB: loop body
LE: loop exit
PB: predicated region body
PF: predicated region fallthrough
CT: control target
= control target key end

     0   :  { %11 = vsyncpa [#allocation4], 0  ;;  %s1089_s0 = inlined_call_operand.vmem [shape: bf16[8,128], index: 0, kind: input, shape index: {}]   ;;  %s1090_s1 = inlined_call_operand.hbm [shape: bf16[3,128,128], index: 1, kind: input, shape index: {}]   ;;  %s1091_s2 = inlined_call_operand.vmem [shape: f32[3,1,128], index: 2, kind: input, shape index: {}]   ;;  %s1092_s3 = inlined_call_operand.vmem [shape: f32[3,1,128], index: 3, kind: input, shape index: {}]   ;;  %s1093_s4 = inlined_call_operand.hbm [shape: bf16[128,128], index: 4, kind: input, shape index: {}]   ;;  %s1094_s5 = inlined_call_operand.vmem [shape: f32[1,128], index: 5, kind: input, shape index: {}]   ;;  %s1095_s6 = inlined_call_operand.hbm [shape: f32[8,128], index: 6, kind: output, shape index: {}]  }
   0x1   :  { %13 = vsyncpa [#allocation4 + $0x1], 0 }
   0x2   :  { %14 = vsyncpa [#allocation7], 0 }
   0x3   :  { %15 = vsyncpa [#allocation5], 0  ;;  %s949_s21 = smov 0   ;;  %s951_s22 = smov 0  }
   0x4   :  { %s953_s23 = smov 0   ;;  %s955_s24 = smov 0  }
   0x5 LB: > { %s968_s25 = sadd.s32 4294967295, %s907_s24   ;;  %p62_p0 = scmp.ne.s32.totalorder %s899_s22, %s895_s21  ;;  %s907_s24 = sphi %s955_s24, %s1102_s24   ;;  %s903_s23 = sphi %s953_s23, %s1101_s23   ;;  %s899_s22 = sphi %s951_s22, %s1100_s22   ;;  %s895_s21 = sphi %s949_s21, %s1099_s21  }
   0x6   : > { %p63_p1 = scmp.eq.s32.totalorder %s968_s25, 0  ;;  %p616_p2 = scmp.ge.s32.totalorder %s907_s24, 1 }
   0x7   : > { %p188_p3 = scmp.lt.s32.totalorder %s907_s24, 4  ;;  %p617_p4 = scmp.ne.s32.totalorder %s968_s25, 0 }
   0x8   : > { %p977_p5 = por %p63_p1, %p62_p0  ;;  %s202_s29 = sshll.u32 %s1093_s4, 4  ;;  %s203_s29 = int_to_ptr.hbm [resolvable:$true] %s202_s29 }
   0x9   : > { %p984_p6 = pnand %p616_p2, %p188_p3  ;;  %s909_s7 = smov [#allocation6]  }
   0xa   : > { %s204_s8 = sshll.u32 %s909_s7, 4  ;;  %s993_s9 = sadd.s32 1, %s907_s24   ;;  %s205_s8 = int_to_ptr.vmem [resolvable:$true] %s204_s8 }
   0xb   : > { %p722_p7 = pneg %p984_p6  ;;  %s910_s10 = smov 64  }
   0xc   : > { %s911_s11 = smov 4   ;;  %s46_s12 = ssub.s32 %s907_s24, %s993_s9 }
   0xd   : > { %p723_p8 = pnand %p722_p7, %p63_p1  ;;  %s49_s13 = sadd.s32 1, %s903_s23 }
   0xe   : > { %p47_p9 = scmp.eq.s32.totalorder %s46_s12, 0  ;;  %p56_p10 = scmp.ne.s32.totalorder %s903_s23, %s899_s22 }
   0xf   : > { %725 = dma.hbm_to_vmem [thread:$0]  (!%p723_p8), %s203_s29, 1024, %s205_s8, [#allocation7], %s910_s10, %s910_s10, %s911_s11  }
  0x10   : > { %p57_p11 = scmp.eq.s32.totalorder %s907_s24, 0  ;;  %p731_p12 = scmp.lt.s32.totalorder %s907_s24, 3 }
  0x11   : > { %s1006_s14 = scalar_select %p47_p9, %s903_s23, %s49_s13  }
  0x12   : > { %p58_p13 = por %p57_p11, %p56_p10  ;;  %s221_s15 = sand.u32 1, %s903_s23  }
  0x13   : > { %s619_s16 = sshll.u32 %s221_s15, 6  ;;  %s695_s17 = sshll.u32 %s907_s24, 6 }
  0x14   : > { %s230_s20 = scalar_lea.hbm %s1090_s1, %s695_s17  ;;  %s225_s21 = scalar_lea.vmem [#allocation3], %s619_s16 }
  0x15   : > { %s233_s27 = sshll.u32 %s225_s21, 4  ;;  %s231_s28 = sshll.u32 %s230_s20, 4  ;;  %s234_s27 = int_to_ptr.vmem [resolvable:$true] %s233_s27  ;;  %s232_s28 = int_to_ptr.hbm [resolvable:$true] %s231_s28 }
  0x16   : > { %p1013_p0 = pnand %p731_p12, %p58_p13  ;;  %s222_s7 = scalar_lea.sflag [#allocation4], %s221_s15 }
  0x17   : > { %s807_s8 = sshra.s32 %s232_s28, 4  ;;  %s814_s16 = scalar_lea.hbm %s1090_s1, 192  ;;  %s808_s8 = int_to_ptr.hbm [resolvable:$true] %s807_s8 }
  0x18   : > { %s809_s12 = scalar_lea.hbm %s808_s8, 64  ;;  %p811_p3 = pneg %p1013_p0 }
  0x19   : > { %p810_p2 = scmp.ne.s32.totalorder %s808_s8, %s809_s12  ;;  %p815_p9 = scmp.lt.s32.totalorder %s808_s8, %s1090_s1 }
  0x1a   : > { %p816_p10 = scmp.lt.s32.totalorder %s814_s16, %s809_s12 }
  0x1b   : > { %p812_p7 = pnand %p811_p3, %p810_p2 }
  0x1c   : > { %p817_p11 = por %p816_p10, %p815_p9 }
  0x1d   : > { %p813_p8 = pneg %p812_p7 }
  0x1f   : > { %p818_p12 = pnand %p817_p11, %p813_p8 }
  0x21   : > { %821 = shalt.err (!%p818_p12)
}
  0x22   : > { %729 = dma.hbm_to_vmem [thread:$0]  (!%p1013_p0), %s232_s28, 1024, %s234_s27, %s222_s7, %s910_s10, %s910_s10, %s911_s11  }
  0x23   : > { %257 = sbr.rel (%p984_p6) target bundleno = 436 (0x1b4), region = 44  ;;  %s259_s15 = sand.u32 (!%p984_p6), 1, %s899_s22  }
  0x24   : > { %s623_s19 = sshll.u32 (!%p984_p6), %s259_s15, 6  ;;  %s260_s20 = scalar_lea.sflag (!%p984_p6), [#allocation4], %s259_s15 }
  0x25   : > { %s263_s21 = scalar_lea.vmem (!%p984_p6), [#allocation3], %s623_s19 }
  0x28   : > { %882 = dma.done.wait (%p977_p5), %s260_s20, 1024  }
  0x29   : > { %884 = vsyncadd (%p977_p5), %s260_s20, 4294966272 }
  0x2a   : > { %886 = dma.done.wait (%p63_p1), [#allocation7], 1024  }
  0x2b   : > { %888 = vsyncadd (%p63_p1), [#allocation7], 4294966272  ;;  %p299_p6 = scmp.lt.s32.totalorder %s968_s25, 2  ;;  %308 = sbr.rel (%p617_p4) target bundleno = 50 (0x32), region = 56 }
  0x2d   : > { %s1043_s30 = scalar_select %p299_p6, %s968_s25, 2 }
  0x2f   : > { %s301_s27 = scalar_lea.vmem %s1091_s2, %s1043_s30  ;;  %s304_s29 = scalar_lea.vmem %s1092_s3, %s1043_s30 }
  0x30   : > { %v309_v0 = vld [vmem:[%s1089_s0] sm:$0xf] }
  0x31   : > { %310 = vst [vmem:[#allocation2] sm:$0xf] %v309_v0 }
  0x32 PF: > { %v703_v1 = vld [vmem:[%s263_s21 + $0x38] sm:$0xff]  ;;  %v702_v2 = vld [vmem:[%s263_s21 + $0x30] sm:$0xff]  ;;  %v701_v3 = vld [vmem:[%s263_s21 + $0x28] sm:$0xff]  ;;  %v912_v10 = vmov 8.0   ;;  %p658_p1 = scmp.ne.s32.totalorder %s968_s25, 2 }
  0x33   : > { %376 = vmatpush.bf16.msra.mxu0 %v703_v1  ;;  %v700_v4 = vld [vmem:[%s263_s21 + $0x20] sm:$0xff]  ;;  %v699_v5 = vld [vmem:[%s263_s21 + $0x18] sm:$0xff]  ;;  %v698_v6 = vld [vmem:[%s263_s21 + $0x10] sm:$0xff]  ;;  %772 = vrcp.f32 %v912_v10 }
  0x34   : > { %v697_v7 = vld [vmem:[%s263_s21 + $0x8] sm:$0xff]  ;;  %v696_v8 = vld [vmem:[%s263_s21] sm:$0xff]  ;;  %v414_v43 = vld [vmem:[%s301_s27] sm:$0x1] }
  0x35   : > { %v427_v47 = vld [vmem:[%s304_s29] sm:$0x1] }
  0x37   : > { %377 = vmatpush.bf16.msra.mxu0 %v702_v2 }
  0x38   : > { %v311_v9 = vld [vmem:[#allocation2] sm:$0xf] }
  0x39   : > { %v773_v11 = vpop.eup %772 }
  0x3a   : > { %v396_v12 = vmul.f32 8.0, %v773_v11  ;;  %vm400_vm0 = vweird.f32 %v773_v11 }
  0x3b   : > { %378 = vmatpush.bf16.msra.mxu0 %v701_v3 }
  0x3c   : > { %v397_v13 = vsub.f32 1.0, %v396_v12 }
  0x3e   : > { %v398_v17 = vmul.f32 %v773_v11, %v397_v13 }
  0x3f   : > { %379 = vmatpush.bf16.msra.mxu0 %v700_v4 }
  0x40   : > { %v399_v22 = vadd.f32 %v773_v11, %v398_v17 }
  0x42   : > { %v401_v28 = vsel %vm400_vm0, %v773_v11, %v399_v22 }
  0x43   : > { %380 = vmatpush.bf16.msra.mxu0 %v699_v5 }
  0x47   : > { %381 = vmatpush.bf16.msra.mxu0 %v698_v6 }
  0x4b   : > { %382 = vmatpush.bf16.msra.mxu0 %v697_v7 }
  0x4f   : > { %383 = vmatpush.bf16.msra.mxu0 %v696_v8 }
  0x52   : > { %384 = vmatmul.bf16.vlgmr.msra.gmra.mxu0 %v311_v9 }
  0xcf   : > { %v385_v14 = vpop.f32.mrf.mxu0 }
  0xd0   : > { %v389_v15 = vrot.slane %v385_v14, 4  ;;  %v403_v16 = vmul.f32 %v385_v14, %v385_v14 }
  0xd2   : > { %v390_v18 = vadd.f32 %v389_v15, %v385_v14  ;;  %v404_v19 = vrot.slane %v403_v16, 4 }
  0xd4   : > { %v391_v20 = vrot.slane %v390_v18, 2  ;;  %v405_v21 = vadd.f32 %v404_v19, %v403_v16 }
  0xd6   : > { %v392_v23 = vadd.f32 %v391_v20, %v390_v18  ;;  %v406_v24 = vrot.slane %v405_v21, 2 }
  0xd7   : > { %v387_v25 = vpop.f32.mrf.mxu0 }
  0xd8   : > { %v393_v26 = vrot.slane %v392_v23, 1  ;;  %v407_v27 = vadd.f32 %v406_v24, %v405_v21 }
  0xda   : > { %v394_v29 = vadd.f32 %v393_v26, %v392_v23  ;;  %v408_v30 = vrot.slane %v407_v27, 1 }
  0xdc   : > { %v402_v31 = vmul.f32 %v401_v28, %v394_v29  ;;  %v409_v32 = vadd.f32 %v408_v30, %v407_v27 }
  0xde   : > { %v410_v33 = vmul.f32 %v409_v32, %v401_v28  ;;  %v411_v34 = vmul.f32 %v402_v31, %v402_v31 }
  0xe0   : > { %v412_v35 = vsub.f32 %v410_v33, %v411_v34 }
  0xe2   : > { %v413_v36 = vmax.f32 %v412_v35, 0.0 }
  0xe4   : > { %v415_v37 = vadd.f32 1e-05, %v413_v36 }
  0xe6   : > { %774 = vrsqrt.f32 %v415_v37  ;;  %vm422_vm2 = vweird.f32 %v415_v37 }
  0xec   : > { %v775_v38 = vpop.eup %774 }
  0xed   : > { %v417_v39 = vmul.f32 %v775_v38, %v415_v37  ;;  %vm423_vm1 = vweird.f32 %v775_v38 }
  0xee   : > { %vm424_vm3 = vmor %vm422_vm2, %vm423_vm1 }
  0xef   : > { %v418_v40 = vmul.f32 %v775_v38, %v417_v39 }
  0xf1   : > { %v419_v41 = vmul.f32 0.5, %v418_v40 }
  0xf3   : > { %v420_v42 = vsub.f32 1.5, %v419_v41 }
  0xf5   : > { %v421_v44 = vmul.f32 %v775_v38, %v420_v42 }
  0xf7   : > { %v425_v45 = vsel %vm424_vm3, %v775_v38, %v421_v44 }
  0xf8   : > { %v426_v46 = vmul.f32 %v425_v45, %v414_v43 }
  0xfa   : > { %v428_v48 = vmul.f32 %v426_v46, %v402_v31  ;;  %v431_v49 = vperm.slane %v426_v46, 0 }
  0xfc   : > { %v429_v50 = vsub.f32 %v427_v47, %v428_v48  ;;  %v433_v51 = vmul.f32 %v431_v49, %v385_v14 }
  0xfe   : > { %v435_v52 = vperm.slane %v429_v50, 0 }
 0x100   : > { %v437_v53 = vadd.f32 %v435_v52, %v433_v51 }
 0x102   : > { %v438_v54 = vmul.f32 0.2, %v437_v53 }
 0x104   : > { %v439_v55 = vmax.f32 %v437_v53, %v438_v54  ;;  %445 = sbr.rel (%p658_p1) target bundleno = 431 (0x1af), region = 60 }
 0x106   : > { %v440_v56 = vpack.c.bf16 %v439_v55, %v439_v55 }
 0x108   : > { %441 = vst [vmem:[#allocation2] sm:$0xf] %v440_v56 }
 0x109   : > { %v711_v57 = vld [vmem:[#allocation6 + $0x38] sm:$0xff]  ;;  %v710_v58 = vld [vmem:[#allocation6 + $0x30] sm:$0xff]  ;;  %v709_v59 = vld [vmem:[#allocation6 + $0x28] sm:$0xff] }
 0x10a   : > { %514 = vmatpush.bf16.msra.mxu0 %v711_v57  ;;  %v708_v60 = vld [vmem:[#allocation6 + $0x20] sm:$0xff]  ;;  %v707_v61 = vld [vmem:[#allocation6 + $0x18] sm:$0xff]  ;;  %v706_v62 = vld [vmem:[#allocation6 + $0x10] sm:$0xff] }
 0x10b   : > { %v705_v63 = vld [vmem:[#allocation6 + $0x8] sm:$0xff]  ;;  %v704_v0 = vld [vmem:[#allocation6] sm:$0xff]  ;;  %v776_v1 = vld [vmem:[%s1094_s5] ss:$0 sm:$0xff] }
 0x10e   : > { %515 = vmatpush.bf16.msra.mxu0 %v710_v58 }
 0x112   : > { %516 = vmatpush.bf16.msra.mxu0 %v709_v59 }
 0x116   : > { %517 = vmatpush.bf16.msra.mxu0 %v708_v60 }
 0x11a   : > { %518 = vmatpush.bf16.msra.mxu0 %v707_v61 }
 0x11e   : > { %519 = vmatpush.bf16.msra.mxu0 %v706_v62 }
 0x122   : > { %520 = vmatpush.bf16.msra.mxu0 %v705_v63 }
 0x126   : > { %521 = vmatpush.bf16.msra.mxu0 %v704_v0 }
 0x129   : > { %522 = vmatmul.bf16.vlgmr.msra.gmra.mxu0 %v440_v56 }
 0x1a6   : > { %v523_v2 = vpop.f32.mrf.mxu0 }
 0x1a7   : > { %v524_v3 = vadd.f32 %v776_v1, %v523_v2 }
 0x1a9   : > { %527 = vst [vmem:[#allocation8] sm:$0xff] %v524_v3 }
 0x1ae   : > { %v525_v4 = vpop.f32.mrf.mxu0 }
 0x1af PF: > { %p733_p4 = scmp.eq.s32.totalorder %s968_s25, 2  ;;  %s913_s15 = smov [#allocation8]  }
 0x1b0   : > { %s534_s19 = sshll.u32 %s913_s15, 4  ;;  %s536_s30 = sshll.u32 %s1095_s6, 4  ;;  %s535_s19 = int_to_ptr.vmem [resolvable:$true] %s534_s19  ;;  %s537_s30 = int_to_ptr.hbm [resolvable:$true] %s536_s30 }
 0x1b1   : > { %719 = dma.vmem_to_hbm [thread:$0]  (%p733_p4), %s535_s19, 128, %s537_s30, [#allocation5]  }
 0x1b2   : > { %890 = dma.done.wait (%p733_p4), [#allocation5], 128  }
 0x1b3   : > { %892 = vsyncadd (%p733_p4), [#allocation5], 4294967168 }
 0x1b4 PF: > { %p18_p5 = scmp.ge.s32.totalorder %s993_s9, 5   ;;  %s1099_s21 = smov %s899_s22 }
 0x1b5   : > { %s1100_s22 = smov %s903_s23  ;;  %s1101_s23 = smov %s1006_s14 }
 0x1b6   : > { %s1102_s24 = smov %s993_s9  ;;  %20 = sbr.rel (!%p18_p5) target bundleno = 5 (0x5), region = 99 }
 0x1bb   :  { %550 = vsyncpa [#allocation4], 1 }
 0x1bc   :  { %552 = vsyncpa [#allocation4 + $0x1], 1 }
 0x1bd   :  { %553 = vsyncpa [#allocation7], 1 }
 0x1be   :  { %554 = vsyncpa [#allocation5], 1 }
 0x1bf   :  { %556 = vsyncpa [#allocation5 + $0x1], 1 }

</bundles_post_ra>
